<compile_context>
chip_gen: v7x
topology: tpu7x:2x2x1
jax: 0.10.0
libtpu: 0.0.40
codegen_flags: <defaults>
</compile_context>

<pallas_src>
import functools

import jax
import jax.numpy as jnp
from jax import lax
from jax.experimental import pallas as pl
from jax.experimental.pallas import tpu as pltpu

F32 = jnp.float32
BF16 = jnp.bfloat16

# Explicit scoped-VMEM limit (>= defaults on v5e/v6e/v7x, leaves v7x headroom).
_CPARAMS = pltpu.CompilerParams(
    dimension_semantics=("parallel",),
    vmem_limit_bytes=48 * 1024 * 1024,
)


# ----------------------------------------------------------------------------- spec helpers
def _tok_spec(n, c):
    # per-batch (1, N, C) tile of a (B, N, C) tensor
    return pl.BlockSpec((1, n, c), lambda b: (b, 0, 0))


def _mat_spec(r, c):
    # full 2-D weight / bias, same block for every grid step
    return pl.BlockSpec((r, c), lambda b: (0, 0))


def _hmat_spec(h, r, c):
    # full head-major 3-D weight
    return pl.BlockSpec((h, r, c), lambda b: (0, 0, 0))


# ----------------------------------------------------------------------------- math helpers
def _erf(x):
    # Abramowitz & Stegun 7.1.26 polynomial approximation of erf (|err| < 1.5e-7),
    # built from exp/mul/add so it lowers cleanly inside Pallas.
    a1, a2, a3, a4, a5 = 0.254829592, -0.284496736, 1.421413741, -1.453152027, 1.061405429
    pp = 0.3275911
    sgn = jnp.where(x >= 0.0, 1.0, -1.0)
    ax = jnp.abs(x)
    t = 1.0 / (1.0 + pp * ax)
    poly = ((((a5 * t + a4) * t + a3) * t + a2) * t + a1) * t
    return sgn * (1.0 - poly * jnp.exp(-ax * ax))


def _gelu_exact(x):
    # F.gelu default (erf-based)
    return 0.5 * x * (1.0 + _erf(x * 0.7071067811865476))


def _layernorm(x, g, b, eps):
    # centered variance (avoids E[x^2]-E[x]^2 cancellation)
    mean = jnp.mean(x, axis=-1, keepdims=True)
    xc = x - mean
    var = jnp.mean(xc * xc, axis=-1, keepdims=True)
    return xc * lax.rsqrt(var + eps) * g + b


def _self_attention(xn, wq, wk, wv, wo, bo, *, heads, dim_head, q_chunk):
    """Multi-head self-attention on one batch element.

    xn: (N, D) f32 post-LayerNorm.  wq/wk/wv: (H, D, d) bf16 head-major.
    wo: (H, d, D) bf16.  bo: (1, D) f32.  Returns (N, D) f32.
    All heads are handled by a single batched dot_general (no per-head loop,
    no lane-narrow slicing, no concat along the lane axis).
    """
    n, d_model = xn.shape
    xb = jnp.broadcast_to(xn.astype(BF16)[None], (heads, n, d_model))

    proj_dims = (((2,), (1,)), ((0,), (0,)))   # (H,N,D) x (H,D,d) -> (H,N,d)
    q = lax.dot_general(xb, wq, proj_dims, preferred_element_type=F32)
    k = lax.dot_general(xb, wk, proj_dims, preferred_element_type=F32)
    v = lax.dot_general(xb, wv, proj_dims, preferred_element_type=F32)
    q = q * (dim_head ** -0.5)
    k_b = k.astype(BF16)
    v_b = v.astype(BF16)

    qk_dims = (((2,), (2,)), ((0,), (0,)))     # (H,T,d) x (H,N,d) -> (H,T,N)
    pv_dims = (((2,), (1,)), ((0,), (0,)))     # (H,T,N) x (H,N,d) -> (H,T,d)
    out_dims = (((2,), (1,)), ((0,), (0,)))    # (H,T,d) x (H,d,D) -> (H,T,D)

    # Query-chunk loop: never materialize the full (H, N, N) score tensor.
    # TODO(synk): for large N this static loop should become a fori_loop / extra
    # grid axis writing into a VMEM scratch instead of a value-level concat.
    tq = min(q_chunk, n)
    pieces = []
    for c in range(pl.cdiv(n, tq)):
        qc = q[:, c * tq:(c + 1) * tq, :].astype(BF16)                    # (H,T,d)
        s = lax.dot_general(qc, k_b, qk_dims, preferred_element_type=F32)  # (H,T,N)
        s = s - jnp.max(s, axis=-1, keepdims=True)
        p = jnp.exp(s)
        # softmax denominator on the (otherwise idle) EUP via approx reciprocal
        p = p * pl.reciprocal(jnp.sum(p, axis=-1, keepdims=True), approx=True)
        o = lax.dot_general(p.astype(BF16), v_b, pv_dims, preferred_element_type=F32)
        y = lax.dot_general(o.astype(BF16), wo, out_dims, preferred_element_type=F32)
        pieces.append(jnp.sum(y, axis=0))                                  # (T,D)
    out = pieces[0] if len(pieces) == 1 else jnp.concatenate(pieces, axis=0)
    return out + bo


# ----------------------------------------------------------------------------- kernels
def gn_projin_kernel(x_ref, gmat_ref, gamma_ref, beta_ref, w_ref, b_ref, o_ref, *, eps):
    """GroupNorm (contiguous channel groups, centered variance) fused with proj_in.

    Group stats: reduce tokens with VPU column sums, then average within each
    group with one tiny (1,C)x(C,C) matmul against a precomputed symmetric
    group-averaging matrix (no onehot round-trip, no in-kernel transpose).
    """
    x = x_ref[0].astype(F32)                              # (N, C)
    gmat = gmat_ref[...]                                  # (C, C) f32

    col_sum = jnp.sum(x, axis=0, keepdims=True)                               # (1, C)
    mean_c = jnp.dot(col_sum, gmat, preferred_element_type=F32)               # (1, C)
    xc = x - mean_c
    var_c = jnp.dot(jnp.sum(xc * xc, axis=0, keepdims=True), gmat,
                    preferred_element_type=F32)                               # (1, C)
    xn = xc * lax.rsqrt(var_c + eps)
    xn = xn * gamma_ref[...].astype(F32) + beta_ref[...].astype(F32)

    y = jnp.dot(xn.astype(BF16), w_ref[...], preferred_element_type=F32)
    y = y + b_ref[...].astype(F32)
    o_ref[0] = y.astype(o_ref.dtype)


def transformer_block_kernel(
        x_ref,
        ln1g_ref, ln1b_ref, wq1_ref, wk1_ref, wv1_ref, wo1_ref, bo1_ref,
        ln2g_ref, ln2b_ref, wq2_ref, wk2_ref, wv2_ref, wo2_ref, bo2_ref,
        ln3g_ref, ln3b_ref, w1_ref, b1_ref, w2_ref, b2_ref,
        o_ref, *, heads, dim_head, ff_inner, eps, q_chunk):
    """One fused BasicTransformerBlock (attn1 + attn2 + GEGLU FF, all residual)."""
    x = x_ref[0].astype(F32)                              # (N, D) residual stream, f32

    # --- x = attn1(LN1(x)) + x  (self-attention) ---
    xn = _layernorm(x, ln1g_ref[...].astype(F32), ln1b_ref[...].astype(F32), eps)
    x = x + _self_attention(xn, wq1_ref[...], wk1_ref[...], wv1_ref[...],
                            wo1_ref[...], bo1_ref[...].astype(F32),
                            heads=heads, dim_head=dim_head, q_chunk=q_chunk)

    # --- x = attn2(LN2(x)) + x  (context=None -> self-attention) ---
    xn = _layernorm(x, ln2g_ref[...].astype(F32), ln2b_ref[...].astype(F32), eps)
    x = x + _self_attention(xn, wq2_ref[...], wk2_ref[...], wv2_ref[...],
                            wo2_ref[...], bo2_ref[...].astype(F32),
                            heads=heads, dim_head=dim_head, q_chunk=q_chunk)

    # --- x = GEGLU_FF(LN3(x)) + x ---
    xn = _layernorm(x, ln3g_ref[...].astype(F32), ln3b_ref[...].astype(F32), eps)
    h = jnp.dot(xn.astype(BF16), w1_ref[...], preferred_element_type=F32)
    h = h + b1_ref[...].astype(F32)
    val, gate = h[:, :ff_inner], h[:, ff_inner:]
    ff = val * _gelu_exact(gate)
    x = x + jnp.dot(ff.astype(BF16), w2_ref[...], preferred_element_type=F32) \
          + b2_ref[...].astype(F32)

    o_ref[0] = x.astype(o_ref.dtype)


def projout_kernel(h_ref, xin_ref, w_ref, b_ref, o_ref):
    """proj_out (zero-initialized 1x1 conv) + residual with the original input."""
    y = jnp.dot(h_ref[0], w_ref[...], preferred_element_type=F32)
    y = y + b_ref[...].astype(F32)
    o_ref[0] = (y + xin_ref[0].astype(F32)).astype(o_ref.dtype)


# ----------------------------------------------------------------------------- wrappers
def _head_major_in(w2d, heads, d_head):
    # (D_in, H*d) -> (H, D_in, d), bf16 MXU operand
    d_in = w2d.shape[0]
    return jnp.transpose(w2d.reshape(d_in, heads, d_head), (1, 0, 2)).astype(BF16)


def _head_major_out(w2d, heads, d_head):
    # (H*d, D_out) -> (H, d, D_out), bf16 MXU operand
    d_out = w2d.shape[1]
    return w2d.reshape(heads, d_head, d_out).astype(BF16)


def _prep_block(blk, n_heads, d_head):
    a1, a2, ff = blk["attn1"], blk["attn2"], blk["ff"]
    return {
        "ln1_g": blk["ln1_g"], "ln1_b": blk["ln1_b"],
        "wq1": _head_major_in(a1["wq"], n_heads, d_head),
        "wk1": _head_major_in(a1["wk"], n_heads, d_head),
        "wv1": _head_major_in(a1["wv"], n_heads, d_head),
        "wo1": _head_major_out(a1["wo"], n_heads, d_head),
        "bo1": a1["bo"],
        "ln2_g": blk["ln2_g"], "ln2_b": blk["ln2_b"],
        "wq2": _head_major_in(a2["wq"], n_heads, d_head),
        "wk2": _head_major_in(a2["wk"], n_heads, d_head),
        "wv2": _head_major_in(a2["wv"], n_heads, d_head),
        "wo2": _head_major_out(a2["wo"], n_heads, d_head),
        "bo2": a2["bo"],
        "ln3_g": blk["ln3_g"], "ln3_b": blk["ln3_b"],
        "w1": ff["w1"].astype(BF16), "b1": ff["b1"],
        "w2": ff["w2"].astype(BF16), "b2": ff["b2"],
    }


def _gn_proj_in(x_tok, gmat, gamma, beta, w_in, b_in, eps):
    B, N, C = x_tok.shape
    inner = w_in.shape[1]
    return pl.pallas_call(
        functools.partial(gn_projin_kernel, eps=eps),
        grid=(B,),
        in_specs=[_tok_spec(N, C), _mat_spec(C, C),
                  _mat_spec(1, C), _mat_spec(1, C),
                  _mat_spec(C, inner), _mat_spec(1, inner)],
        out_specs=_tok_spec(N, inner),
        out_shape=jax.ShapeDtypeStruct((B, N, inner), BF16),
        compiler_params=_CPARAMS,
    )(x_tok, gmat, gamma, beta, w_in, b_in)


def _transformer_block(x_tok, kb, *, n_heads, d_head, eps, q_chunk):
    B, N, D = x_tok.shape
    ff2 = kb["w1"].shape[1]
    ff_inner = ff2 // 2
    attn_specs = [_mat_spec(1, D), _mat_spec(1, D),
                  _hmat_spec(n_heads, D, d_head), _hmat_spec(n_heads, D, d_head),
                  _hmat_spec(n_heads, D, d_head), _hmat_spec(n_heads, d_head, D),
                  _mat_spec(1, D)]
    in_specs = ([_tok_spec(N, D)] + attn_specs + attn_specs +
                [_mat_spec(1, D), _mat_spec(1, D),
                 _mat_spec(D, ff2), _mat_spec(1, ff2),
                 _mat_spec(ff_inner, D), _mat_spec(1, D)])
    kern = functools.partial(transformer_block_kernel, heads=n_heads,
                             dim_head=d_head, ff_inner=ff_inner, eps=eps,
                             q_chunk=q_chunk)
    return pl.pallas_call(
        kern,
        grid=(B,),
        in_specs=in_specs,
        out_specs=_tok_spec(N, D),
        out_shape=jax.ShapeDtypeStruct((B, N, D), BF16),
        compiler_params=_CPARAMS,
    )(x_tok,
      kb["ln1_g"], kb["ln1_b"], kb["wq1"], kb["wk1"], kb["wv1"], kb["wo1"], kb["bo1"],
      kb["ln2_g"], kb["ln2_b"], kb["wq2"], kb["wk2"], kb["wv2"], kb["wo2"], kb["bo2"],
      kb["ln3_g"], kb["ln3_b"], kb["w1"], kb["b1"], kb["w2"], kb["b2"])


def _proj_out(h_tok, x_tok, w_out, b_out):
    B, N, inner = h_tok.shape
    C = w_out.shape[1]
    return pl.pallas_call(
        projout_kernel,
        grid=(B,),
        in_specs=[_tok_spec(N, inner), _tok_spec(N, C),
                  _mat_spec(inner, C), _mat_spec(1, C)],
        out_specs=_tok_spec(N, C),
        out_shape=jax.ShapeDtypeStruct((B, N, C), F32),
        compiler_params=_CPARAMS,
    )(h_tok, x_tok, w_out, b_out)


def spatial_transformer(x_nchw, p, *, n_heads, d_head, num_groups=32,
                        eps_gn=1e-6, eps_ln=1e-5, q_chunk=128):
    B, C, H, W = x_nchw.shape
    N = H * W

    # 'b c h w -> b (h w) c'  (TODO(synk): fold into the first/last kernels' DMAs)
    x_tok = jnp.transpose(x_nchw, (0, 2, 3, 1)).reshape(B, N, C)

    # Symmetric group-averaging matrix: gmat[i, j] = 1/(N*gs) if same group.
    gs = C // num_groups
    gid = jnp.arange(C) // gs
    gmat = (gid[:, None] == gid[None, :]).astype(F32) / float(N * gs)

    # GroupNorm + proj_in (fused)
    h = _gn_proj_in(x_tok, gmat, p["gn_gamma"], p["gn_beta"],
                    p["proj_in_w"].astype(BF16), p["proj_in_b"], eps_gn)

    # transformer blocks (context=None -> both attentions are self-attention)
    for blk in p["blocks"]:
        kb = _prep_block(blk, n_heads, d_head)
        h = _transformer_block(h, kb, n_heads=n_heads, d_head=d_head,
                               eps=eps_ln, q_chunk=q_chunk)

    # proj_out + residual with the original input
    out_tok = _proj_out(h, x_tok, p["proj_out_w"].astype(BF16), p["proj_out_b"])
    return jnp.transpose(out_tok.reshape(B, H, W, C), (0, 3, 1, 2))


# ----------------------------------------------------------------------------- params
def init_params(key, c, n_heads, d_head, depth=1, num_groups=32, zero_proj_out=True):
    """Deterministic synthetic init. Weights stored as (in, out) matrices."""
    inner = n_heads * d_head
    ff_inner = inner * 4
    ks = iter(jax.random.split(key, 64))

    def nrm(shape, scale=0.02):
        return (scale * jax.random.normal(next(ks), shape)).astype(F32)

    p = {
        "gn_gamma": jnp.ones((1, c), F32) + nrm((1, c), 0.05),
        "gn_beta": nrm((1, c), 0.05),
        "proj_in_w": nrm((c, inner)),
        "proj_in_b": nrm((1, inner)),
        # zero_module(nn.Conv2d(...)) -> proj_out weights and bias are all zeros
        "proj_out_w": jnp.zeros((inner, c), F32) if zero_proj_out else nrm((inner, c)),
        "proj_out_b": jnp.zeros((1, c), F32) if zero_proj_out else nrm((1, c)),
        "blocks": [],
    }
    for _ in range(depth):
        def attn_params():
            return {"wq": nrm((inner, inner)), "wk": nrm((inner, inner)),
                    "wv": nrm((inner, inner)), "wo": nrm((inner, inner)),
                    "bo": nrm((1, inner))}
        blk = {
            "ln1_g": jnp.ones((1, inner), F32), "ln1_b": jnp.zeros((1, inner), F32),
            "attn1": attn_params(),
            "ln2_g": jnp.ones((1, inner), F32), "ln2_b": jnp.zeros((1, inner), F32),
            "attn2": attn_params(),
            "ln3_g": jnp.ones((1, inner), F32), "ln3_b": jnp.zeros((1, inner), F32),
            "ff": {"w1": nrm((inner, 2 * ff_inner)), "b1": nrm((1, 2 * ff_inner)),
                   "w2": nrm((ff_inner, inner)), "b2": nrm((1, inner))},
        }
        p["blocks"].append(blk)
    return p


# ----------------------------------------------------------------------------- pure-JAX reference
def _ref_layernorm(x, g, b, eps):
    m = jnp.mean(x, axis=-1, keepdims=True)
    v = jnp.mean((x - m) ** 2, axis=-1, keepdims=True)
    return (x - m) / jnp.sqrt(v + eps) * g + b


def _ref_attention(xn, w, heads, d_head):
    B, N, D = xn.shape
    q = xn @ w["wq"]
    k = xn @ w["wk"]
    v = xn @ w["wv"]

    def split(t):
        return jnp.transpose(t.reshape(B, N, heads, d_head), (0, 2, 1, 3))

    q, k, v = split(q), split(k), split(v)
    s = jnp.einsum("bhnd,bhmd->bhnm", q * (d_head ** -0.5), k)
    pr = jax.nn.softmax(s, axis=-1)
    o = jnp.einsum("bhnm,bhmd->bhnd", pr, v)
    o = jnp.transpose(o, (0, 2, 1, 3)).reshape(B, N, D)
    return o @ w["wo"] + w["bo"]


def reference_forward(x_nchw, p, *, n_heads, d_head, num_groups=32,
                      eps_gn=1e-6, eps_ln=1e-5):
    B, C, H, W = x_nchw.shape
    N = H * W
    x = x_nchw.astype(F32)
    gs = C // num_groups
    xg = x.reshape(B, num_groups, gs * H * W)
    m = jnp.mean(xg, axis=-1, keepdims=True)
    v = jnp.mean((xg - m) ** 2, axis=-1, keepdims=True)
    xn = ((xg - m) / jnp.sqrt(v + eps_gn)).reshape(B, C, H, W)
    xn = xn * p["gn_gamma"].reshape(1, C, 1, 1) + p["gn_beta"].reshape(1, C, 1, 1)

    h = jnp.transpose(xn, (0, 2, 3, 1)).reshape(B, N, C) @ p["proj_in_w"] + p["proj_in_b"]
    for blk in p["blocks"]:
        h = h + _ref_attention(_ref_layernorm(h, blk["ln1_g"], blk["ln1_b"], eps_ln),
                               blk["attn1"], n_heads, d_head)
        h = h + _ref_attention(_ref_layernorm(h, blk["ln2_g"], blk["ln2_b"], eps_ln),
                               blk["attn2"], n_heads, d_head)
        hn = _ref_layernorm(h, blk["ln3_g"], blk["ln3_b"], eps_ln)
        u = hn @ blk["ff"]["w1"] + blk["ff"]["b1"]
        ffi = blk["ff"]["w2"].shape[0]
        val, gate = u[:, :, :ffi], u[:, :, ffi:]
        h = h + (val * jax.nn.gelu(gate, approximate=False)) @ blk["ff"]["w2"] + blk["ff"]["b2"]

    y = h @ p["proj_out_w"] + p["proj_out_b"]
    y = jnp.transpose(y.reshape(B, H, W, C), (0, 3, 1, 2))
    return y + x_nchw


# ----------------------------------------------------------------------------- main
if __name__ == "__main__":
    # Shapes consistent with the module: in_channels=32 (Normalize uses 32 groups),
    # n_heads=4, d_head=8 -> inner_dim=32, depth=1, spatial 8x8, batch 2.
    B, C, Hs, Ws = 2, 32, 8, 8
    n_heads, d_head, depth = 4, 8, 1

    key = jax.random.PRNGKey(0)
    k_params, k_x, k_params2 = jax.random.split(key, 3)
    x = jax.random.normal(k_x, (B, C, Hs, Ws), dtype=F32)

    # 1) spec-faithful run: zero-initialized proj_out => output must equal input.
    params = init_params(k_params, C, n_heads, d_head, depth=depth, num_groups=32)
    out = spatial_transformer(x, params, n_heads=n_heads, d_head=d_head, q_chunk=32)
    out = jax.block_until_ready(out)
    assert out.shape == x.shape and out.dtype == x.dtype
    assert bool(jnp.allclose(out, x)), "zero-init proj_out should make output == input"

    # 2) numerical check of the transformer math against a pure-JAX f32 reference
    #    (test-only non-zero proj_out so the interior computation is visible;
    #     tolerance covers bf16 matmul operands + approx softmax reciprocal).
    params_nz = init_params(k_params2, C, n_heads, d_head, depth=depth,
                            num_groups=32, zero_proj_out=False)
    out_nz = jax.block_until_ready(
        spatial_transformer(x, params_nz, n_heads=n_heads, d_head=d_head, q_chunk=32))
    ref = reference_forward(x, params_nz, n_heads=n_heads, d_head=d_head)
    assert bool(jnp.allclose(out_nz, ref, rtol=1e-2, atol=1e-2)), \
        "Pallas output mismatch vs pure-JAX reference"

    print("KERNEL_OK")
</pallas_src>

<mosaic_0001>
module attributes {stable_mosaic.version = 11 : i64} {
  func.func @gn_projin_kernel(%arg0: i32, %arg1: memref<1x64x32xf32, #tpu.memory_space<vmem>>, %arg2: memref<32x32xf32, #tpu.memory_space<vmem>>, %arg3: memref<1x32xf32, #tpu.memory_space<vmem>>, %arg4: memref<1x32xf32, #tpu.memory_space<vmem>>, %arg5: memref<32x32xbf16, #tpu.memory_space<vmem>>, %arg6: memref<1x32xf32, #tpu.memory_space<vmem>>, %arg7: memref<1x64x32xbf16, #tpu.memory_space<vmem>>) attributes {dimension_semantics = [#tpu.dimension_semantics<parallel>], iteration_bounds = array<i64: 2>, scalar_prefetch = 0 : i64, scratch_operands = 0 : i64, tpu.core_type = #tpu.core_type<tc>, window_params = [{transform_indices = @transform_0, window_bounds = array<i64: 1, 64, 32>}, {pipeline_mode = #tpu.pipeline_mode<synchronous>, transform_indices = @transform_1, window_bounds = array<i64: 32, 32>}, {pipeline_mode = #tpu.pipeline_mode<synchronous>, transform_indices = @transform_2, window_bounds = array<i64: 1, 32>}, {pipeline_mode = #tpu.pipeline_mode<synchronous>, transform_indices = @transform_3, window_bounds = array<i64: 1, 32>}, {pipeline_mode = #tpu.pipeline_mode<synchronous>, transform_indices = @transform_4, window_bounds = array<i64: 32, 32>}, {pipeline_mode = #tpu.pipeline_mode<synchronous>, transform_indices = @transform_5, window_bounds = array<i64: 1, 32>}, {transform_indices = @transform_6, window_bounds = array<i64: 1, 64, 32>}]} {
    %c0 = arith.constant 0 : index
    %c0_0 = arith.constant 0 : index
    %c0_1 = arith.constant 0 : index
    %0 = vector.load %arg1[%c0, %c0_0, %c0_1] : memref<1x64x32xf32, #tpu.memory_space<vmem>>, vector<1x64x32xf32>
    %1 = vector.shape_cast %0 : vector<1x64x32xf32> to vector<64x32xf32>
    %c0_2 = arith.constant 0 : index
    %c0_3 = arith.constant 0 : index
    %2 = vector.load %arg2[%c0_2, %c0_3] : memref<32x32xf32, #tpu.memory_space<vmem>>, vector<32x32xf32>
    %cst = arith.constant dense<0.000000e+00> : vector<32xf32>
    %3 = vector.multi_reduction <add>, %1, %cst [0] : vector<64x32xf32> to vector<32xf32>
    %4 = vector.shape_cast %3 : vector<32xf32> to vector<1x32xf32>
    %cst_4 = arith.constant dense<0.000000e+00> : vector<1x32xf32>
    %5 = tpu.matmul %4, %2, %cst_4 {dimension_numbers = #tpu.dot_dimension_numbers<[1], [0], [0], [1], [0, 0, 1, 1], [], []>} : vector<1x32xf32>, vector<32x32xf32>, vector<1x32xf32> -> vector<1x32xf32>
    %6 = vector.broadcast %5 : vector<1x32xf32> to vector<64x32xf32>
    %7 = arith.subf %1, %6 : vector<64x32xf32>
    %8 = arith.mulf %7, %7 : vector<64x32xf32>
    %cst_5 = arith.constant dense<0.000000e+00> : vector<32xf32>
    %9 = vector.multi_reduction <add>, %8, %cst_5 [0] : vector<64x32xf32> to vector<32xf32>
    %10 = vector.shape_cast %9 : vector<32xf32> to vector<1x32xf32>
    %cst_6 = arith.constant dense<0.000000e+00> : vector<1x32xf32>
    %11 = tpu.matmul %10, %2, %cst_6 {dimension_numbers = #tpu.dot_dimension_numbers<[1], [0], [0], [1], [0, 0, 1, 1], [], []>} : vector<1x32xf32>, vector<32x32xf32>, vector<1x32xf32> -> vector<1x32xf32>
    %cst_7 = arith.constant 9.99999997E-7 : f32
    %12 = vector.broadcast %cst_7 : f32 to vector<1x32xf32>
    %13 = arith.addf %11, %12 : vector<1x32xf32>
    %14 = math.rsqrt %13 : vector<1x32xf32>
    %15 = vector.broadcast %14 : vector<1x32xf32> to vector<64x32xf32>
    %16 = arith.mulf %7, %15 : vector<64x32xf32>
    %c0_8 = arith.constant 0 : index
    %c0_9 = arith.constant 0 : index
    %17 = vector.load %arg3[%c0_8, %c0_9] : memref<1x32xf32, #tpu.memory_space<vmem>>, vector<1x32xf32>
    %18 = vector.broadcast %17 : vector<1x32xf32> to vector<64x32xf32>
    %19 = arith.mulf %16, %18 : vector<64x32xf32>
    %c0_10 = arith.constant 0 : index
    %c0_11 = arith.constant 0 : index
    %20 = vector.load %arg4[%c0_10, %c0_11] : memref<1x32xf32, #tpu.memory_space<vmem>>, vector<1x32xf32>
    %21 = vector.broadcast %20 : vector<1x32xf32> to vector<64x32xf32>
    %22 = arith.addf %19, %21 : vector<64x32xf32>
    %23 = arith.truncf %22 : vector<64x32xf32> to vector<64x32xbf16>
    %c0_12 = arith.constant 0 : index
    %c0_13 = arith.constant 0 : index
    %24 = vector.load %arg5[%c0_12, %c0_13] : memref<32x32xbf16, #tpu.memory_space<vmem>>, vector<32x32xbf16>
    %cst_14 = arith.constant dense<0.000000e+00> : vector<64x32xf32>
    %25 = tpu.matmul %23, %24, %cst_14 {dimension_numbers = #tpu.dot_dimension_numbers<[1], [0], [0], [1], [0, 0, 1, 1], [], []>} : vector<64x32xbf16>, vector<32x32xbf16>, vector<64x32xf32> -> vector<64x32xf32>
    %c0_15 = arith.constant 0 : index
    %c0_16 = arith.constant 0 : index
    %26 = vector.load %arg6[%c0_15, %c0_16] : memref<1x32xf32, #tpu.memory_space<vmem>>, vector<1x32xf32>
    %27 = vector.broadcast %26 : vector<1x32xf32> to vector<64x32xf32>
    %28 = arith.addf %25, %27 : vector<64x32xf32>
    %29 = arith.truncf %28 : vector<64x32xf32> to vector<64x32xbf16>
    %c0_17 = arith.constant 0 : index
    %c0_18 = arith.constant 0 : index
    %c0_19 = arith.constant 0 : index
    %30 = vector.load %arg7[%c0_17, %c0_18, %c0_19] : memref<1x64x32xbf16, #tpu.memory_space<vmem>>, vector<1x64x32xbf16>
    %31 = vector.shape_cast %30 : vector<1x64x32xbf16> to vector<64x32xbf16>
    %32 = vector.shape_cast %29 : vector<64x32xbf16> to vector<1x64x32xbf16>
    tpu.vector_store %arg7[%c0_17, %c0_18, %c0_19], %32 {strides = array<i32>} : memref<1x64x32xbf16, #tpu.memory_space<vmem>>, vector<1x64x32xbf16>,
    return
  }
  func.func @transform_0(%arg0: i32) -> (i32, i32, i32) {
    %c0_i32 = arith.constant 0 : i32
    %c0_i32_0 = arith.constant 0 : i32
    %c0_i32_1 = arith.constant 0 : i32
    return %arg0, %c0_i32, %c0_i32_0 : i32, i32, i32
  }
  func.func @transform_1(%arg0: i32) -> (i32, i32) {
    %c0_i32 = arith.constant 0 : i32
    %c0_i32_0 = arith.constant 0 : i32
    %c0_i32_1 = arith.constant 0 : i32
    return %c0_i32, %c0_i32_0 : i32, i32
  }
  func.func @transform_2(%arg0: i32) -> (i32, i32) {
    %c0_i32 = arith.constant 0 : i32
    %c0_i32_0 = arith.constant 0 : i32
    %c0_i32_1 = arith.constant 0 : i32
    return %c0_i32, %c0_i32_0 : i32, i32
  }
  func.func @transform_3(%arg0: i32) -> (i32, i32) {
    %c0_i32 = arith.constant 0 : i32
    %c0_i32_0 = arith.constant 0 : i32
    %c0_i32_1 = arith.constant 0 : i32
    return %c0_i32, %c0_i32_0 : i32, i32
  }
  func.func @transform_4(%arg0: i32) -> (i32, i32) {
    %c0_i32 = arith.constant 0 : i32
    %c0_i32_0 = arith.constant 0 : i32
    %c0_i32_1 = arith.constant 0 : i32
    return %c0_i32, %c0_i32_0 : i32, i32
  }
  func.func @transform_5(%arg0: i32) -> (i32, i32) {
    %c0_i32 = arith.constant 0 : i32
    %c0_i32_0 = arith.constant 0 : i32
    %c0_i32_1 = arith.constant 0 : i32
    return %c0_i32, %c0_i32_0 : i32, i32
  }
  func.func @transform_6(%arg0: i32) -> (i32, i32, i32) {
    %c0_i32 = arith.constant 0 : i32
    %c0_i32_0 = arith.constant 0 : i32
    %c0_i32_1 = arith.constant 0 : i32
    return %arg0, %c0_i32, %c0_i32_0 : i32, i32, i32
  }
}

</mosaic_0001>

<bundles_post_ra>
// kernel: tpu_custom_call.1
= control target key start
LH: loop header
LB: loop body
LE: loop exit
PB: predicated region body
PF: predicated region fallthrough
CT: control target
= control target key end

     0   :  { %s880_s21 = smov 0   ;;  %s960_s0 = inlined_call_operand.vmem [shape: f32[2,64,32], index: 0, kind: input, shape index: {}]   ;;  %s961_s1 = inlined_call_operand.vmem [shape: f32[32,32], index: 1, kind: input, shape index: {}]   ;;  %s962_s2 = inlined_call_operand.vmem [shape: f32[1,32], index: 2, kind: input, shape index: {}]   ;;  %s963_s3 = inlined_call_operand.vmem [shape: f32[1,32], index: 3, kind: input, shape index: {}]   ;;  %s964_s4 = inlined_call_operand.vmem [shape: bf16[32,32], index: 4, kind: input, shape index: {}]   ;;  %s965_s5 = inlined_call_operand.vmem [shape: f32[1,32], index: 5, kind: input, shape index: {}]   ;;  %s966_s6 = inlined_call_operand.vmem [shape: bf16[2,64,32], index: 6, kind: output, shape index: {}]  }
   0x1 LB: > { %s717_s22 = sadd.s32 4294967295, %s840_s21   ;;  %p721_p0 = scmp.ge.s32.totalorder %s840_s21, 1  ;;  %s840_s21 = sphi %s880_s21, %s16_s21  }
   0x2   : > { %p212_p1 = scmp.lt.s32.totalorder %s840_s21, 3 }
   0x4   : > { %p213_p2 = pnand %p721_p0, %p212_p1 }
   0x5   : > { %v261_v0 = vld [vmem:[%s961_s1] sm:$0xff] (!%p213_p2)  ;;  %v262_v1 = vld [vmem:[%s961_s1 + $0x8] sm:$0xff] (!%p213_p2)  ;;  %v263_v2 = vld [vmem:[%s961_s1 + $0x10] sm:$0xff] (!%p213_p2)  ;;  %v842_v3 = vmov (!%p213_p2), 0.0|0.0   ;;  %vm843_vm0 = vmmov (!%p213_p2), 0   ;;  %v844_v6 = vmov (!%p213_p2), 0.0   ;;  %v360_v37 = vlaneseq (!%p213_p2) }
   0x6   : > { %216 = sbr.rel (%p213_p2) target bundleno = 753 (0x2f1), region = 44  ;;  %807 = vmatprep.subr.bf16.mxu1 (!%p213_p2), %v842_v3  ;;  %v808_v4 = vpack.c.bf16 (!%p213_p2), %v262_v1, %v261_v0  ;;  %v264_v5 = vld [vmem:[%s961_s1 + $0x18] sm:$0xff] (!%p213_p2)  ;;  %781 = vmatprep.mubr.msk.f32.mxu1 (!%p213_p2), %vm843_vm0, %v844_v6  ;;  %p242_p3 = scmp.lt.s32.totalorder (!%p213_p2), %s717_s22, 1  ;;  %vm265_vm1 = vcmask (!%p213_p2), 261120   ;;  %vm653_vm2 = vcmask (!%p213_p2), 257024  }
   0x7   : > { %v811_v7 = vpack.c.bf16 (!%p213_p2), %v264_v5, %v263_v2  ;;  %v361_v38 = vshrl.u32 (!%p213_p2), %v360_v37, 7 }
   0x8   : > { %809 = vmatpush3.bf16.msra.mxu1 (!%p213_p2), %v808_v4 }
   0x9   : > { %810 = vmatprep.subr.bf16.mxu1 (!%p213_p2), %v842_v3  ;;  %v362_v39 = vsub.s32 (!%p213_p2), 0, %v361_v38 }
   0xc   : > { %812 = vmatpush3.bf16.msra.mxu1 (!%p213_p2), %v811_v7 }
   0xd   : > { %s968_s22 = smov (!%p242_p3, %s717_s22), 1  ;;  %813 = vmatprep.subr.bf16.mxu1 %v842_v3 }
   0xe   : > { %s747_s7 = sshll.u32 %s968_s22, 6  ;;  %s748_s23 = sshll.u32 %s968_s22, 5 }
   0xf   : > { %s246_s10 = scalar_lea.vmem %s960_s0, %s747_s7  ;;  %s251_s26 = scalar_lea.vmem %s966_s6, %s748_s23 }
  0x10   : > { %v253_v8 = vld [vmem:[%s246_s10] sm:$0xff]  ;;  %v254_v9 = vld [vmem:[%s246_s10 + $0x8] sm:$0xff]  ;;  %v255_v10 = vld [vmem:[%s246_s10 + $0x10] sm:$0xff] }
  0x11   : > { %v256_v11 = vld [vmem:[%s246_s10 + $0x18] sm:$0xff]  ;;  %v266_v12 = vsel %vm265_vm1, %v253_v8, 0.0  ;;  %v267_v13 = vsel %vm265_vm1, %v254_v9, 0.0  ;;  %v269_v14 = vsel %vm265_vm1, %v255_v10, 0.0  ;;  %v257_v15 = vld [vmem:[%s246_s10 + $0x20] sm:$0xff]  ;;  %v258_v18 = vld [vmem:[%s246_s10 + $0x28] sm:$0xff] }
  0x12   : > { %v268_v16 = vadd.f32 %v267_v13, %v266_v12  ;;  %v271_v17 = vsel %vm265_vm1, %v256_v11, 0.0  ;;  %v273_v20 = vsel %vm265_vm1, %v257_v15, 0.0  ;;  %v259_v21 = vld [vmem:[%s246_s10 + $0x30] sm:$0xff]  ;;  %v275_v23 = vsel %vm265_vm1, %v258_v18, 0.0  ;;  %v260_v24 = vld [vmem:[%s246_s10 + $0x38] sm:$0xff] }
  0x13   : > { %v277_v26 = vsel %vm265_vm1, %v259_v21, 0.0  ;;  %v279_v28 = vsel %vm265_vm1, %v260_v24, 0.0 }
  0x14   : > { %v270_v19 = vadd.f32 %v269_v14, %v268_v16  ;;  %v830_v16 = vld [vmem:[%s964_s4] sm:$0xff]  }
  0x15   : > { %795 = vmatprep.subr.bf16.mxu0 %v830_v16 }
  0x16   : > { %v272_v22 = vadd.f32 %v271_v17, %v270_v19  ;;  %v831_v17 = vld [vmem:[%s964_s4 + $0x8] sm:$0xff]   ;;  %796 = vmatpush3.bf16.msra.mxu0 %v830_v16 }
  0x17   : > { %797 = vmatprep.subr.bf16.mxu0 %v831_v17 }
  0x18   : > { %v274_v25 = vadd.f32 %v273_v20, %v272_v22 }
  0x1a   : > { %v276_v27 = vadd.f32 %v275_v23, %v274_v25  ;;  %798 = vmatpush3.bf16.msra.mxu0 %v831_v17  ;;  %v728_v23 = vld [vmem:[%s962_s2] ss:$0 sm:$0xff] }
  0x1c   : > { %v278_v29 = vadd.f32 %v277_v26, %v276_v27 }
  0x1e   : > { %v280_v30 = vadd.f32 %v279_v28, %v278_v29  ;;  %v729_v28 = vld [vmem:[%s963_s3] ss:$0 sm:$0xff] }
  0x20   : > { %v281_v31 = vrot.slane %v280_v30, 4 }
  0x22   : > { %v282_v32 = vadd.f32 %v281_v31, %v280_v30 }
  0x24   : > { %v283_v33 = vrot.slane %v282_v32, 2 }
  0x26   : > { %v284_v34 = vadd.f32 %v283_v33, %v282_v32 }
  0x28   : > { %v285_v35 = vrot.slane %v284_v34, 1 }
  0x2a   : > { %v286_v36 = vadd.f32 %v285_v35, %v284_v34 }
  0x2c   : > { %782 = vmatmul.mubr.msk.f32.vlgmr.msra.gmra.mrb[0].mxu1 %vm265_vm1, %v286_v36 }
  0x2d   : > { %815 = vmatpush3.bf16.msra.mxu1 %v808_v4  ;;  %792 = vmatprep.mubr.msk.f32.mxu1 %vm843_vm0, %v844_v6 }
  0x2e   : > { %816 = vmatprep.subr.bf16.mxu1 %v842_v3 }
  0x31   : > { %818 = vmatpush3.bf16.msra.mxu1 %v811_v7 }
  0xff   : > { %v356_v40 = vpop.f32.mrb[0].mxu1 }
 0x100   : > { %v363_v41 = vrot.slane %v356_v40, %v362_v39  ;;  %v783_v42 = vpop.f32.mrb[1].mxu1 }
 0x102   : > { %v364_v43 = vsub.f32 %v253_v8, %v363_v41  ;;  %v365_v44 = vsub.f32 %v254_v9, %v363_v41  ;;  %v366_v45 = vsub.f32 %v255_v10, %v363_v41  ;;  %v367_v46 = vsub.f32 %v256_v11, %v363_v41 }
 0x103   : > { %v368_v47 = vsub.f32 %v257_v15, %v363_v41  ;;  %v369_v51 = vsub.f32 %v258_v18, %v363_v41  ;;  %v370_v56 = vsub.f32 %v259_v21, %v363_v41  ;;  %v371_v60 = vsub.f32 %v260_v24, %v363_v41 }
 0x104   : > { %v372_v48 = vmul.f32 %v364_v43, %v364_v43  ;;  %v373_v49 = vmul.f32 %v365_v44, %v365_v44  ;;  %v374_v50 = vmul.f32 %v366_v45, %v366_v45  ;;  %v375_v52 = vmul.f32 %v367_v46, %v367_v46 }
 0x105   : > { %v376_v57 = vmul.f32 %v368_v47, %v368_v47  ;;  %v377_v61 = vmul.f32 %v369_v51, %v369_v51  ;;  %v378_v0 = vmul.f32 %v370_v56, %v370_v56  ;;  %v379_v3 = vmul.f32 %v371_v60, %v371_v60 }
 0x106   : > { %v380_v53 = vsel %vm265_vm1, %v372_v48, 0.0  ;;  %v381_v54 = vsel %vm265_vm1, %v373_v49, 0.0  ;;  %v383_v58 = vsel %vm265_vm1, %v374_v50, 0.0  ;;  %v385_v62 = vsel %vm265_vm1, %v375_v52, 0.0 }
 0x107   : > { %v382_v55 = vadd.f32 %v381_v54, %v380_v53  ;;  %v387_v1 = vsel %vm265_vm1, %v376_v57, 0.0  ;;  %v389_v4 = vsel %vm265_vm1, %v377_v61, 0.0  ;;  %v391_v6 = vsel %vm265_vm1, %v378_v0, 0.0  ;;  %v730_v53 = vld [vmem:[%s965_s5] ss:$0 sm:$0xff] }
 0x108   : > { %v393_v8 = vsel %vm265_vm1, %v379_v3, 0.0 }
 0x109   : > { %v384_v59 = vadd.f32 %v383_v58, %v382_v55 }
 0x10b   : > { %v386_v63 = vadd.f32 %v385_v62, %v384_v59 }
 0x10d   : > { %v388_v2 = vadd.f32 %v387_v1, %v386_v63 }
 0x10f   : > { %v390_v5 = vadd.f32 %v389_v4, %v388_v2 }
 0x111   : > { %v392_v7 = vadd.f32 %v391_v6, %v390_v5 }
 0x113   : > { %v394_v9 = vadd.f32 %v393_v8, %v392_v7 }
 0x115   : > { %v395_v10 = vrot.slane %v394_v9, 4 }
 0x117   : > { %v396_v11 = vadd.f32 %v395_v10, %v394_v9 }
 0x119   : > { %v397_v12 = vrot.slane %v396_v11, 2 }
 0x11b   : > { %v398_v13 = vadd.f32 %v397_v12, %v396_v11 }
 0x11d   : > { %v399_v14 = vrot.slane %v398_v13, 1 }
 0x11f   : > { %v400_v15 = vadd.f32 %v399_v14, %v398_v13 }
 0x121   : > { %793 = vmatmul.mubr.msk.f32.vlgmr.msra.gmra.mrb[2].mxu1 %vm265_vm1, %v400_v15 }
 0x1f4   : > { %v470_v18 = vpop.f32.mrb[2].mxu1 }
 0x1f5   : > { %v471_v19 = vadd.f32 1e-06, %v470_v18  ;;  %v794_v20 = vpop.f32.mrb[3].mxu1 }
 0x1f7   : > { %832 = vrsqrt.f32 %v471_v19 }
 0x201   : > { %v833_v21 = vpop.eup %832 }
 0x202   : > { %v478_v22 = vrot.slane %v833_v21, %v362_v39 }
 0x204   : > { %v479_v24 = vmul.f32 %v478_v22, %v364_v43  ;;  %v480_v25 = vmul.f32 %v478_v22, %v365_v44  ;;  %v481_v26 = vmul.f32 %v478_v22, %v366_v45  ;;  %v482_v27 = vmul.f32 %v478_v22, %v367_v46 }
 0x205   : > { %v483_v29 = vmul.f32 %v478_v22, %v368_v47  ;;  %v484_v30 = vmul.f32 %v478_v22, %v369_v51  ;;  %v485_v37 = vmul.f32 %v478_v22, %v370_v56  ;;  %v486_v38 = vmul.f32 %v478_v22, %v371_v60 }
 0x206   : > { %v494_v31 = vmul.f32 %v728_v23, %v479_v24  ;;  %v495_v32 = vmul.f32 %v728_v23, %v480_v25  ;;  %v496_v33 = vmul.f32 %v728_v23, %v481_v26  ;;  %v497_v34 = vmul.f32 %v728_v23, %v482_v27 }
 0x207   : > { %v498_v35 = vmul.f32 %v728_v23, %v483_v29  ;;  %v499_v36 = vmul.f32 %v728_v23, %v484_v30  ;;  %v500_v48 = vmul.f32 %v728_v23, %v485_v37  ;;  %v501_v47 = vmul.f32 %v728_v23, %v486_v38 }
 0x208   : > { %v509_v39 = vadd.f32 %v729_v28, %v494_v31  ;;  %v510_v40 = vadd.f32 %v729_v28, %v495_v32  ;;  %v511_v41 = vadd.f32 %v729_v28, %v496_v33  ;;  %v512_v42 = vadd.f32 %v729_v28, %v497_v34 }
 0x209   : > { %v513_v43 = vadd.f32 %v729_v28, %v498_v35  ;;  %v514_v44 = vadd.f32 %v729_v28, %v499_v36  ;;  %v515_v50 = vadd.f32 %v729_v28, %v500_v48  ;;  %v516_v51 = vadd.f32 %v729_v28, %v501_v47 }
 0x20a   : > { %v517_v45 = vpack.c.bf16 %v510_v40, %v509_v39  ;;  %v518_v46 = vpack.c.bf16 %v512_v42, %v511_v41 }
 0x20b   : > { %v519_v49 = vpack.c.bf16 %v514_v44, %v513_v43  ;;  %v520_v52 = vpack.c.bf16 %v516_v51, %v515_v50 }
 0x20c   : > { %799 = vmatprep.mubr.msk.bf16.mxu0 %vm265_vm1, %v517_v45 }
 0x20d   : > { %800 = vmatmul.mubr.msk.bf16.vlgmr.msra.gmra.mrb[0].mxu0 %vm265_vm1, %v518_v46 }
 0x20e   : > { %803 = vmatprep.mubr.msk.bf16.mxu0 %vm265_vm1, %v519_v49 }
 0x215   : > { %804 = vmatmul.mubr.msk.bf16.gmra.mrb[4].mxu0 %vm265_vm1, %v520_v52 }
 0x2e0   : > { %v801_v54 = vpop.f32.mrb[0].mxu0 }
 0x2e1   : > { %v599_v55 = vadd.f32 %v801_v54, %v730_v53  ;;  %v590_v56 = vpop.f32.mrb[1].mxu0 }
 0x2e2   : > { %v591_v57 = vadd.f32 %v730_v53, %v590_v56  ;;  %v802_v58 = vpop.f32.mrb[2].mxu0 }
 0x2e3   : > { %v751_v59 = vpack.c.bf16 %v599_v55, %v599_v55  ;;  %v602_v60 = vadd.f32 %v802_v58, %v730_v53  ;;  %v593_v61 = vpop.f32.mrb[3].mxu0 }
 0x2e4   : > { %v749_v62 = vpack.c.bf16 %v591_v57, %v591_v57  ;;  %v594_v63 = vadd.f32 %v730_v53, %v593_v61 }
 0x2e5   : > { %656 = vst.msk [vmem:[%s251_s26 + $0x8] sm:$0xf] %vm653_vm2, %v751_v59  ;;  %v752_v0 = vpack.c.bf16 %v602_v60, %v602_v60 }
 0x2e6   : > { %654 = vst.msk [vmem:[%s251_s26] sm:$0xf] %vm653_vm2, %v749_v62  ;;  %v750_v1 = vpack.c.bf16 %v594_v63, %v594_v63 }
 0x2e7   : > { %657 = vst.msk [vmem:[%s251_s26 + $0xc] sm:$0xf] %vm653_vm2, %v752_v0 }
 0x2e8   : > { %655 = vst.msk [vmem:[%s251_s26 + $0x4] sm:$0xf] %vm653_vm2, %v750_v1  ;;  %v805_v2 = vpop.f32.mrb[4].mxu0 }
 0x2e9   : > { %v615_v3 = vadd.f32 %v805_v2, %v730_v53  ;;  %v606_v4 = vpop.f32.mrb[5].mxu0 }
 0x2ea   : > { %v607_v5 = vadd.f32 %v730_v53, %v606_v4  ;;  %v806_v6 = vpop.f32.mrb[6].mxu0 }
 0x2eb   : > { %v755_v7 = vpack.c.bf16 %v615_v3, %v615_v3  ;;  %v618_v8 = vadd.f32 %v806_v6, %v730_v53  ;;  %v609_v9 = vpop.f32.mrb[7].mxu0 }
 0x2ec   : > { %v753_v10 = vpack.c.bf16 %v607_v5, %v607_v5  ;;  %v610_v11 = vadd.f32 %v730_v53, %v609_v9 }
 0x2ed   : > { %660 = vst.msk [vmem:[%s251_s26 + $0x18] sm:$0xf] %vm653_vm2, %v755_v7  ;;  %v756_v12 = vpack.c.bf16 %v618_v8, %v618_v8 }
 0x2ee   : > { %658 = vst.msk [vmem:[%s251_s26 + $0x10] sm:$0xf] %vm653_vm2, %v753_v10  ;;  %v754_v13 = vpack.c.bf16 %v610_v11, %v610_v11 }
 0x2ef   : > { %661 = vst.msk [vmem:[%s251_s26 + $0x1c] sm:$0xf] %vm653_vm2, %v756_v12 }
 0x2f0   : > { %659 = vst.msk [vmem:[%s251_s26 + $0x14] sm:$0xf] %vm653_vm2, %v754_v13 }
 0x2f1 PF: > { %s16_s21 = sadd.s32 1, %s840_s21  }
 0x2f2   : > { %p13_p4 = scmp.ge.s32.totalorder %s16_s21, 4  }
 0x2f4   :  { %15 = sbr.rel (!%p13_p4) target bundleno = 1 (0x1), region = 74 }

</bundles_post_ra>
